<compile_context>
chip_gen: v5e
topology: v5e:2x2
jax: 0.10.0
libtpu: 0.0.40
codegen_flags: <defaults>
</compile_context>

<pallas_src>
import functools

import jax
import jax.numpy as jnp
from jax import lax
from jax.experimental import pallas as pl
from jax.experimental.pallas import tpu as pltpu

EPS = 1e-5


# ----------------------------------------------------------------------------
# Wrapper-side weight preprocessing (static, pure JAX).
# ----------------------------------------------------------------------------
def _row_toeplitz(w_oihw, W):
    """Fold the 3 dx taps + all input channels of a 3x3 conv into matmul weights.

    w_oihw: (Cout, Cin, 3, 3).  Returns T of shape (3, W*Cin, W*Cout) with
      T[dy, x_in*Cin + ci, x_out*Cout + co]
          = w[co, ci, dy, x_in - x_out + 1]   if |x_in - x_out| <= 1 else 0.
    For a row slab X of shape (rows, W*Cin) holding input row (y + dy - 1),
    X @ T[dy] accumulates that dy tap for every (x_out, co) at once.  Width
    zero-padding (padding=1 along x) is implicit in the Toeplitz structure.
    """
    wt = jnp.transpose(w_oihw.astype(jnp.float32), (2, 3, 1, 0))  # (dy, dx, Cin, Cout)
    Cin, Cout = wt.shape[2], wt.shape[3]
    xi = jnp.arange(W)[:, None]                  # x_in
    xo = jnp.arange(W)[None, :]                  # x_out
    d = xi - xo + 1                              # dx tap index
    valid = (d >= 0) & (d <= 2)
    t = wt[:, jnp.clip(d, 0, 2)]                 # (3, W_in, W_out, Cin, Cout)
    t = jnp.where(valid[None, :, :, None, None], t, 0.0)
    t = jnp.transpose(t, (0, 1, 3, 2, 4))        # (3, W_in, Cin, W_out, Cout)
    return t.reshape(3, W * Cin, W * Cout)


# ----------------------------------------------------------------------------
# Kernel helpers (traced inside the kernel).
# ----------------------------------------------------------------------------
def _shifted_rows(x2, H):
    """x2: (N*H, L) f32.  Returns (row y-1, row y+1) with zero rows at the
    per-image top/bottom boundary.  Uses XLU sublane rolls + a one-row mask
    (the mask also kills the cross-image wraparound rows)."""
    NH = x2.shape[0]
    row_in_img = lax.broadcasted_iota(jnp.int32, x2.shape, 0) % H
    xm = jnp.where(row_in_img == 0, 0.0, pltpu.roll(x2, 1, axis=0))        # y-1
    xp = jnp.where(row_in_img == H - 1, 0.0, pltpu.roll(x2, NH - 1, axis=0))  # y+1
    return xm, xp


def _conv3x3_rows(x2, t_ref, H):
    """One 3x3 conv as three per-dy-tap MXU matmuls accumulated in f32.

    x2:    (N*H, W*Cin) f32 activations (rows = image rows, lanes = width x chan)
    t_ref: (3, W*Cin, W*Cout) row-Toeplitz weight ref (f32 or bf16).
    Returns (N*H, W*Cout) float32 (pre-BN, no bias).
    """
    dt = t_ref.dtype
    xm, xp = _shifted_rows(x2, H)
    acc = jnp.dot(xm.astype(dt), t_ref[0], preferred_element_type=jnp.float32)
    acc += jnp.dot(x2.astype(dt), t_ref[1], preferred_element_type=jnp.float32)
    acc += jnp.dot(xp.astype(dt), t_ref[2], preferred_element_type=jnp.float32)
    return acc


def _lane_channel_sum(v, Cout, W):
    """v: (1, W*Cout).  Returns (1, W*Cout) where every lane holds the sum over
    the W width-copies of its channel (lane layout: lane = x*Cout + c).
    log2(W)-step XLU roll+add tree; result is already broadcast lane-dense.
    Requires W to be a power of two (asserted in the wrapper)."""
    shift = Cout
    while shift < Cout * W:
        v = v + pltpu.roll(v, shift, axis=1)
        shift *= 2
    return v


def _bn_relu(acc, gamma_f, beta_f, Cout, W, count):
    """Training-mode BatchNorm2d (biased var, eps=1e-5) + ReLU, fully lane-dense.

    acc:     (rows, W*Cout) f32 pre-BN activations.
    gamma_f, beta_f: (1, W*Cout) f32, pre-broadcast per-channel affine params.
    """
    s1 = _lane_channel_sum(jnp.sum(acc, axis=0, keepdims=True), Cout, W)
    s2 = _lane_channel_sum(jnp.sum(acc * acc, axis=0, keepdims=True), Cout, W)
    inv_n = 1.0 / count
    mean = s1 * inv_n                                     # (1, W*Cout), lane-dense
    var = s2 * inv_n - mean * mean                        # biased, like PyTorch train
    scale = gamma_f * lax.rsqrt(var + EPS)
    shift = beta_f - mean * scale
    return jnp.maximum(acc * scale + shift, 0.0)


def double_conv2d_kernel(H, W, Cout, count,
                         x_ref, t1_ref, t2_ref,
                         g1_ref, be1_ref, g2_ref, be2_ref,
                         o_ref):
    """Fused (conv3x3 + BN + ReLU) * 2 on lane-dense (N*H, W*C) slabs.

    x_ref : (N*H, W*Cin)  f32 input activations
    t*_ref: (3, W*Cin_l, W*Cout) row-Toeplitz conv weights (f32 or bf16)
    g*, be*: (1, W*Cout)  f32 pre-broadcast BN affine parameters
    o_ref : (N*H, W*Cout) lane-dense output (>= 128 lanes, unmasked stores)
    """
    # conv1 + BN1 + ReLU.  Conv bias intentionally omitted (cancels with BN mean).
    acc1 = _conv3x3_rows(x_ref[...], t1_ref, H)                    # (N*H, W*Cout) f32
    h1 = _bn_relu(acc1, g1_ref[...], be1_ref[...], Cout, W, count)

    # conv2 + BN2 + ReLU on the lane-dense f32 intermediate.
    acc2 = _conv3x3_rows(h1, t2_ref, H)
    y = _bn_relu(acc2, g2_ref[...], be2_ref[...], Cout, W, count)
    o_ref[...] = y.astype(o_ref.dtype)


# ----------------------------------------------------------------------------
# Public wrapper.
# ----------------------------------------------------------------------------
def double_conv2d(x_nchw, params, *, use_bf16_matmul=True, out_dtype=jnp.float32):
    """Apply DoubleConv2d. x_nchw: (N, Cin, H, W). Returns (N, Cout, H, W).

    use_bf16_matmul=True (default, recommended on v5e, v6e and v7x — the MXU is
    natively bf16 on all of them) casts MXU operands (conv weights up front,
    activations at the dot) to bf16 with f32 accumulation.  BN/ReLU stay f32.
    out_dtype=jnp.bfloat16 halves output writeback when the consumer accepts it.
    """
    N, Cin, H, W = x_nchw.shape
    Cout = params["w1"].shape[0]
    assert W > 0 and (W & (W - 1)) == 0, "lane roll-tree BN stats assume W is a power of two"
    cdtype = jnp.bfloat16 if use_bf16_matmul else jnp.float32

    # NCHW -> lane-dense (N*H, W*Cin) slab (layout plumbing only, no compute).
    # Activations stay f32 in VMEM (sublane rolls on f32); cast to bf16 at the dot.
    x = jnp.transpose(x_nchw, (0, 2, 3, 1)).reshape(N * H, W * Cin).astype(jnp.float32)

    # Per-dy-tap row-Toeplitz conv weights (dx taps + channels folded into K).
    t1 = _row_toeplitz(params["w1"], W).astype(cdtype)     # (3, W*Cin,  W*Cout)
    t2 = _row_toeplitz(params["w2"], W).astype(cdtype)     # (3, W*Cout, W*Cout)

    # BN affine params, pre-broadcast to the lane-dense (1, W*Cout) layout
    # (lane = x*Cout + c).  Conv biases are NOT passed: training-mode BN
    # subtracts the batch mean immediately after the conv, so they cancel.
    def bcast(p):
        return jnp.tile(p.astype(jnp.float32).reshape(Cout), (W,)).reshape(1, W * Cout)

    g1, be1 = bcast(params["g1"]), bcast(params["be1"])
    g2, be2 = bcast(params["g2"]), bcast(params["be2"])

    kernel = functools.partial(double_conv2d_kernel, H, W, Cout, float(N * H * W))

    def full(shape):
        nd = len(shape)
        return pl.BlockSpec(shape, lambda i, _nd=nd: (0,) * _nd)

    out2d = pl.pallas_call(
        kernel,
        out_shape=jax.ShapeDtypeStruct((N * H, W * Cout), out_dtype),
        grid=(1,),
        in_specs=[
            full(x.shape),
            full(t1.shape), full(t2.shape),
            full(g1.shape), full(be1.shape), full(g2.shape), full(be2.shape),
        ],
        out_specs=full((N * H, W * Cout)),
        compiler_params=pltpu.CompilerParams(
            dimension_semantics=("arbitrary",),
            vmem_limit_bytes=32 * 1024 * 1024),
    )(x, t1, t2, g1, be1, g2, be2)

    # Lane-dense slab -> NCHW (layout plumbing in the wrapper).
    return jnp.transpose(out2d.reshape(N, H, W, Cout), (0, 3, 1, 2))


# ----------------------------------------------------------------------------
# Pure-JAX reference of the PyTorch module (training-mode BN, with conv biases).
# ----------------------------------------------------------------------------
def reference_forward(x_nchw, params):
    def conv(x, w, b):
        y = lax.conv_general_dilated(
            x, w, window_strides=(1, 1), padding=((1, 1), (1, 1)),
            dimension_numbers=("NCHW", "OIHW", "NCHW"),
            precision=lax.Precision.HIGHEST)
        return y + b[None, :, None, None]

    def bn_relu(x, g, be):
        mean = jnp.mean(x, axis=(0, 2, 3), keepdims=True)
        var = jnp.mean((x - mean) ** 2, axis=(0, 2, 3), keepdims=True)
        xn = (x - mean) / jnp.sqrt(var + EPS)
        return jnp.maximum(g[None, :, None, None] * xn + be[None, :, None, None], 0.0)

    x = bn_relu(conv(x_nchw, params["w1"], params["b1"]), params["g1"], params["be1"])
    x = bn_relu(conv(x, params["w2"], params["b2"]), params["g2"], params["be2"])
    return x


if __name__ == "__main__":
    N, Cin, Cout, H, W = 2, 4, 8, 16, 16

    key = jax.random.PRNGKey(0)
    ks = jax.random.split(key, 9)
    x = jax.random.normal(ks[0], (N, Cin, H, W), jnp.float32)

    params = {
        # Conv2d(in_ch, out_ch, 3) weights (OIHW) and biases.
        "w1": 0.1 * jax.random.normal(ks[1], (Cout, Cin, 3, 3), jnp.float32),
        "b1": 0.1 * jax.random.normal(ks[2], (Cout,), jnp.float32),
        "w2": 0.1 * jax.random.normal(ks[3], (Cout, Cout, 3, 3), jnp.float32),
        "b2": 0.1 * jax.random.normal(ks[4], (Cout,), jnp.float32),
        # BatchNorm2d affine params (perturbed from gamma=1 / beta=0 so the
        # check is non-trivial).
        "g1": 1.0 + 0.1 * jax.random.normal(ks[5], (Cout,), jnp.float32),
        "be1": 0.1 * jax.random.normal(ks[6], (Cout,), jnp.float32),
        "g2": 1.0 + 0.1 * jax.random.normal(ks[7], (Cout,), jnp.float32),
        "be2": 0.1 * jax.random.normal(ks[8], (Cout,), jnp.float32),
    }

    ref = jax.block_until_ready(reference_forward(x, params))

    # f32-operand path: same semantics as the PyTorch module (incl. bias
    # cancellation under training-mode BN).  Tolerance leaves headroom for MXU
    # multi-pass f32 rounding on either side.
    out = jax.block_until_ready(double_conv2d(x, params, use_bf16_matmul=False))
    assert out.shape == (N, Cout, H, W), out.shape
    assert jnp.allclose(out, ref, atol=1e-3, rtol=1e-3), float(jnp.max(jnp.abs(out - ref)))

    # Default bf16-MXU-operand path (recommended on v5e/v6e/v7x): f32 accumulate
    # + f32 BN/ReLU.
    out_bf16 = jax.block_until_ready(double_conv2d(x, params))
    assert out_bf16.shape == (N, Cout, H, W), out_bf16.shape
    assert bool(jnp.isfinite(out_bf16).all())
    assert float(jnp.mean(jnp.abs(out_bf16 - ref))) < 0.1

    print("KERNEL_OK")
</pallas_src>

<mosaic_0001>
module attributes {stable_mosaic.version = 11 : i64} {
  func.func @double_conv2d_kernel(%arg0: i32, %arg1: memref<32x64xf32, #tpu.memory_space<vmem>>, %arg2: memref<3x64x128xf32, #tpu.memory_space<vmem>>, %arg3: memref<3x128x128xf32, #tpu.memory_space<vmem>>, %arg4: memref<1x128xf32, #tpu.memory_space<vmem>>, %arg5: memref<1x128xf32, #tpu.memory_space<vmem>>, %arg6: memref<1x128xf32, #tpu.memory_space<vmem>>, %arg7: memref<1x128xf32, #tpu.memory_space<vmem>>, %arg8: memref<32x128xf32, #tpu.memory_space<vmem>>) attributes {dimension_semantics = [#tpu.dimension_semantics<arbitrary>], iteration_bounds = array<i64: 1>, scalar_prefetch = 0 : i64, scratch_operands = 0 : i64, tpu.core_type = #tpu.core_type<tc>, window_params = [{pipeline_mode = #tpu.pipeline_mode<synchronous>, transform_indices = @transform_0, window_bounds = array<i64: 32, 64>}, {pipeline_mode = #tpu.pipeline_mode<synchronous>, transform_indices = @transform_1, window_bounds = array<i64: 3, 64, 128>}, {pipeline_mode = #tpu.pipeline_mode<synchronous>, transform_indices = @transform_2, window_bounds = array<i64: 3, 128, 128>}, {pipeline_mode = #tpu.pipeline_mode<synchronous>, transform_indices = @transform_3, window_bounds = array<i64: 1, 128>}, {pipeline_mode = #tpu.pipeline_mode<synchronous>, transform_indices = @transform_4, window_bounds = array<i64: 1, 128>}, {pipeline_mode = #tpu.pipeline_mode<synchronous>, transform_indices = @transform_5, window_bounds = array<i64: 1, 128>}, {pipeline_mode = #tpu.pipeline_mode<synchronous>, transform_indices = @transform_6, window_bounds = array<i64: 1, 128>}, {pipeline_mode = #tpu.pipeline_mode<synchronous>, transform_indices = @transform_7, window_bounds = array<i64: 32, 128>}]} {
    %c0 = arith.constant 0 : index
    %c0_0 = arith.constant 0 : index
    %0 = vector.load %arg1[%c0, %c0_0] : memref<32x64xf32, #tpu.memory_space<vmem>>, vector<32x64xf32>
    %1 = tpu.iota {dimensions = array<i32: 0>} : vector<32x64xi32>
    %c16_i32 = arith.constant 16 : i32
    %c0_i32 = arith.constant 0 : i32
    %2 = arith.cmpi eq, %c16_i32, %c0_i32 : i32
    %c1_i32 = arith.constant 1 : i32
    %3 = arith.select %2, %c1_i32, %c16_i32 : i32
    %4 = vector.broadcast %3 : i32 to vector<32x64xi32>
    %5 = arith.remsi %1, %4 : vector<32x64xi32>
    %c0_i32_1 = arith.constant 0 : i32
    %6 = vector.broadcast %c0_i32_1 : i32 to vector<32x64xi32>
    %7 = arith.cmpi ne, %5, %6 : vector<32x64xi32>
    %c0_i32_2 = arith.constant 0 : i32
    %8 = vector.broadcast %c0_i32_2 : i32 to vector<32x64xi32>
    %9 = arith.cmpi slt, %5, %8 : vector<32x64xi32>
    %c0_i32_3 = arith.constant 0 : i32
    %10 = arith.cmpi slt, %3, %c0_i32_3 : i32
    %11 = vector.broadcast %10 : i1 to vector<32x64xi1>
    %12 = vector.broadcast %11 : vector<32x64xi1> to vector<32x64xi1>
    %13 = arith.xori %9, %12 : vector<32x64xi1>
    %14 = arith.andi %13, %7 : vector<32x64xi1>
    %15 = vector.broadcast %3 : i32 to vector<32x64xi32>
    %16 = arith.addi %5, %15 : vector<32x64xi32>
    %17 = arith.select %14, %16, %5 : vector<32x64xi1>, vector<32x64xi32>
    %c0_i32_4 = arith.constant 0 : i32
    %18 = vector.broadcast %c0_i32_4 : i32 to vector<32x64xi32>
    %19 = arith.cmpi eq, %17, %18 : vector<32x64xi32>
    %c1_i32_5 = arith.constant 1 : i32
    %20 = tpu.dynamic_rotate %0 by %c1_i32_5 dim 0 : vector<32x64xf32>, i32 -> vector<32x64xf32>
    %cst = arith.constant 0.000000e+00 : f32
    %21 = vector.broadcast %cst : f32 to vector<32x64xf32>
    %22 = arith.select %19, %21, %20 : vector<32x64xi1>, vector<32x64xf32>
    %c15_i32 = arith.constant 15 : i32
    %23 = vector.broadcast %c15_i32 : i32 to vector<32x64xi32>
    %24 = arith.cmpi eq, %17, %23 : vector<32x64xi32>
    %c31_i32 = arith.constant 31 : i32
    %25 = tpu.dynamic_rotate %0 by %c31_i32 dim 0 : vector<32x64xf32>, i32 -> vector<32x64xf32>
    %cst_6 = arith.constant 0.000000e+00 : f32
    %26 = vector.broadcast %cst_6 : f32 to vector<32x64xf32>
    %27 = arith.select %24, %26, %25 : vector<32x64xi1>, vector<32x64xf32>
    %c0_7 = arith.constant 0 : index
    %c0_8 = arith.constant 0 : index
    %c0_9 = arith.constant 0 : index
    %28 = vector.load %arg2[%c0_7, %c0_8, %c0_9] : memref<3x64x128xf32, #tpu.memory_space<vmem>>, vector<1x64x128xf32>
    %29 = vector.shape_cast %28 : vector<1x64x128xf32> to vector<64x128xf32>
    %cst_10 = arith.constant dense<0.000000e+00> : vector<32x128xf32>
    %30 = tpu.matmul %22, %29, %cst_10 {dimension_numbers = #tpu.dot_dimension_numbers<[1], [0], [0], [1], [0, 0, 1, 1], [], []>} : vector<32x64xf32>, vector<64x128xf32>, vector<32x128xf32> -> vector<32x128xf32>
    %c1 = arith.constant 1 : index
    %c0_11 = arith.constant 0 : index
    %c0_12 = arith.constant 0 : index
    %31 = vector.load %arg2[%c1, %c0_11, %c0_12] : memref<3x64x128xf32, #tpu.memory_space<vmem>>, vector<1x64x128xf32>
    %32 = vector.shape_cast %31 : vector<1x64x128xf32> to vector<64x128xf32>
    %cst_13 = arith.constant dense<0.000000e+00> : vector<32x128xf32>
    %33 = tpu.matmul %0, %32, %cst_13 {dimension_numbers = #tpu.dot_dimension_numbers<[1], [0], [0], [1], [0, 0, 1, 1], [], []>} : vector<32x64xf32>, vector<64x128xf32>, vector<32x128xf32> -> vector<32x128xf32>
    %34 = arith.addf %30, %33 : vector<32x128xf32>
    %c2 = arith.constant 2 : index
    %c0_14 = arith.constant 0 : index
    %c0_15 = arith.constant 0 : index
    %35 = vector.load %arg2[%c2, %c0_14, %c0_15] : memref<3x64x128xf32, #tpu.memory_space<vmem>>, vector<1x64x128xf32>
    %36 = vector.shape_cast %35 : vector<1x64x128xf32> to vector<64x128xf32>
    %cst_16 = arith.constant dense<0.000000e+00> : vector<32x128xf32>
    %37 = tpu.matmul %27, %36, %cst_16 {dimension_numbers = #tpu.dot_dimension_numbers<[1], [0], [0], [1], [0, 0, 1, 1], [], []>} : vector<32x64xf32>, vector<64x128xf32>, vector<32x128xf32> -> vector<32x128xf32>
    %38 = arith.addf %34, %37 : vector<32x128xf32>
    %c0_17 = arith.constant 0 : index
    %c0_18 = arith.constant 0 : index
    %39 = vector.load %arg4[%c0_17, %c0_18] : memref<1x128xf32, #tpu.memory_space<vmem>>, vector<1x128xf32>
    %c0_19 = arith.constant 0 : index
    %c0_20 = arith.constant 0 : index
    %40 = vector.load %arg5[%c0_19, %c0_20] : memref<1x128xf32, #tpu.memory_space<vmem>>, vector<1x128xf32>
    %cst_21 = arith.constant dense<0.000000e+00> : vector<128xf32>
    %41 = vector.multi_reduction <add>, %38, %cst_21 [0] : vector<32x128xf32> to vector<128xf32>
    %42 = vector.shape_cast %41 : vector<128xf32> to vector<1x128xf32>
    %c8_i32 = arith.constant 8 : i32
    %43 = tpu.dynamic_rotate %42 by %c8_i32 dim 1 : vector<1x128xf32>, i32 -> vector<1x128xf32>
    %44 = arith.addf %42, %43 : vector<1x128xf32>
    %c16_i32_22 = arith.constant 16 : i32
    %45 = tpu.dynamic_rotate %44 by %c16_i32_22 dim 1 : vector<1x128xf32>, i32 -> vector<1x128xf32>
    %46 = arith.addf %44, %45 : vector<1x128xf32>
    %c32_i32 = arith.constant 32 : i32
    %47 = tpu.dynamic_rotate %46 by %c32_i32 dim 1 : vector<1x128xf32>, i32 -> vector<1x128xf32>
    %48 = arith.addf %46, %47 : vector<1x128xf32>
    %c64_i32 = arith.constant 64 : i32
    %49 = tpu.dynamic_rotate %48 by %c64_i32 dim 1 : vector<1x128xf32>, i32 -> vector<1x128xf32>
    %50 = arith.addf %48, %49 : vector<1x128xf32>
    %51 = arith.mulf %38, %38 : vector<32x128xf32>
    %cst_23 = arith.constant dense<0.000000e+00> : vector<128xf32>
    %52 = vector.multi_reduction <add>, %51, %cst_23 [0] : vector<32x128xf32> to vector<128xf32>
    %53 = vector.shape_cast %52 : vector<128xf32> to vector<1x128xf32>
    %c8_i32_24 = arith.constant 8 : i32
    %54 = tpu.dynamic_rotate %53 by %c8_i32_24 dim 1 : vector<1x128xf32>, i32 -> vector<1x128xf32>
    %55 = arith.addf %53, %54 : vector<1x128xf32>
    %c16_i32_25 = arith.constant 16 : i32
    %56 = tpu.dynamic_rotate %55 by %c16_i32_25 dim 1 : vector<1x128xf32>, i32 -> vector<1x128xf32>
    %57 = arith.addf %55, %56 : vector<1x128xf32>
    %c32_i32_26 = arith.constant 32 : i32
    %58 = tpu.dynamic_rotate %57 by %c32_i32_26 dim 1 : vector<1x128xf32>, i32 -> vector<1x128xf32>
    %59 = arith.addf %57, %58 : vector<1x128xf32>
    %c64_i32_27 = arith.constant 64 : i32
    %60 = tpu.dynamic_rotate %59 by %c64_i32_27 dim 1 : vector<1x128xf32>, i32 -> vector<1x128xf32>
    %61 = arith.addf %59, %60 : vector<1x128xf32>
    %cst_28 = arith.constant 0.001953125 : f32
    %62 = vector.broadcast %cst_28 : f32 to vector<1x128xf32>
    %63 = arith.mulf %50, %62 : vector<1x128xf32>
    %cst_29 = arith.constant 0.001953125 : f32
    %64 = vector.broadcast %cst_29 : f32 to vector<1x128xf32>
    %65 = arith.mulf %61, %64 : vector<1x128xf32>
    %66 = arith.mulf %63, %63 : vector<1x128xf32>
    %67 = arith.subf %65, %66 : vector<1x128xf32>
    %cst_30 = arith.constant 9.99999974E-6 : f32
    %68 = vector.broadcast %cst_30 : f32 to vector<1x128xf32>
    %69 = arith.addf %67, %68 : vector<1x128xf32>
    %70 = math.rsqrt %69 : vector<1x128xf32>
    %71 = arith.mulf %39, %70 : vector<1x128xf32>
    %72 = arith.mulf %63, %71 : vector<1x128xf32>
    %73 = arith.subf %40, %72 : vector<1x128xf32>
    %74 = vector.broadcast %71 : vector<1x128xf32> to vector<32x128xf32>
    %75 = arith.mulf %38, %74 : vector<32x128xf32>
    %76 = vector.broadcast %73 : vector<1x128xf32> to vector<32x128xf32>
    %77 = arith.addf %75, %76 : vector<32x128xf32>
    %cst_31 = arith.constant 0.000000e+00 : f32
    %78 = vector.broadcast %cst_31 : f32 to vector<32x128xf32>
    %79 = arith.maximumf %77, %78 : vector<32x128xf32>
    %80 = tpu.iota {dimensions = array<i32: 0>} : vector<32x128xi32>
    %c16_i32_32 = arith.constant 16 : i32
    %c0_i32_33 = arith.constant 0 : i32
    %81 = arith.cmpi eq, %c16_i32_32, %c0_i32_33 : i32
    %c1_i32_34 = arith.constant 1 : i32
    %82 = arith.select %81, %c1_i32_34, %c16_i32_32 : i32
    %83 = vector.broadcast %82 : i32 to vector<32x128xi32>
    %84 = arith.remsi %80, %83 : vector<32x128xi32>
    %c0_i32_35 = arith.constant 0 : i32
    %85 = vector.broadcast %c0_i32_35 : i32 to vector<32x128xi32>
    %86 = arith.cmpi ne, %84, %85 : vector<32x128xi32>
    %c0_i32_36 = arith.constant 0 : i32
    %87 = vector.broadcast %c0_i32_36 : i32 to vector<32x128xi32>
    %88 = arith.cmpi slt, %84, %87 : vector<32x128xi32>
    %c0_i32_37 = arith.constant 0 : i32
    %89 = arith.cmpi slt, %82, %c0_i32_37 : i32
    %90 = vector.broadcast %89 : i1 to vector<32x128xi1>
    %91 = vector.broadcast %90 : vector<32x128xi1> to vector<32x128xi1>
    %92 = arith.xori %88, %91 : vector<32x128xi1>
    %93 = arith.andi %92, %86 : vector<32x128xi1>
    %94 = vector.broadcast %82 : i32 to vector<32x128xi32>
    %95 = arith.addi %84, %94 : vector<32x128xi32>
    %96 = arith.select %93, %95, %84 : vector<32x128xi1>, vector<32x128xi32>
    %c0_i32_38 = arith.constant 0 : i32
    %97 = vector.broadcast %c0_i32_38 : i32 to vector<32x128xi32>
    %98 = arith.cmpi eq, %96, %97 : vector<32x128xi32>
    %c1_i32_39 = arith.constant 1 : i32
    %99 = tpu.dynamic_rotate %79 by %c1_i32_39 dim 0 : vector<32x128xf32>, i32 -> vector<32x128xf32>
    %cst_40 = arith.constant 0.000000e+00 : f32
    %100 = vector.broadcast %cst_40 : f32 to vector<32x128xf32>
    %101 = arith.select %98, %100, %99 : vector<32x128xi1>, vector<32x128xf32>
    %c15_i32_41 = arith.constant 15 : i32
    %102 = vector.broadcast %c15_i32_41 : i32 to vector<32x128xi32>
    %103 = arith.cmpi eq, %96, %102 : vector<32x128xi32>
    %c31_i32_42 = arith.constant 31 : i32
    %104 = tpu.dynamic_rotate %79 by %c31_i32_42 dim 0 : vector<32x128xf32>, i32 -> vector<32x128xf32>
    %cst_43 = arith.constant 0.000000e+00 : f32
    %105 = vector.broadcast %cst_43 : f32 to vector<32x128xf32>
    %106 = arith.select %103, %105, %104 : vector<32x128xi1>, vector<32x128xf32>
    %c0_44 = arith.constant 0 : index
    %c0_45 = arith.constant 0 : index
    %c0_46 = arith.constant 0 : index
    %107 = vector.load %arg3[%c0_44, %c0_45, %c0_46] : memref<3x128x128xf32, #tpu.memory_space<vmem>>, vector<1x128x128xf32>
    %108 = vector.shape_cast %107 : vector<1x128x128xf32> to vector<128x128xf32>
    %cst_47 = arith.constant dense<0.000000e+00> : vector<32x128xf32>
    %109 = tpu.matmul %101, %108, %cst_47 {dimension_numbers = #tpu.dot_dimension_numbers<[1], [0], [0], [1], [0, 0, 1, 1], [], []>} : vector<32x128xf32>, vector<128x128xf32>, vector<32x128xf32> -> vector<32x128xf32>
    %c1_48 = arith.constant 1 : index
    %c0_49 = arith.constant 0 : index
    %c0_50 = arith.constant 0 : index
    %110 = vector.load %arg3[%c1_48, %c0_49, %c0_50] : memref<3x128x128xf32, #tpu.memory_space<vmem>>, vector<1x128x128xf32>
    %111 = vector.shape_cast %110 : vector<1x128x128xf32> to vector<128x128xf32>
    %cst_51 = arith.constant dense<0.000000e+00> : vector<32x128xf32>
    %112 = tpu.matmul %79, %111, %cst_51 {dimension_numbers = #tpu.dot_dimension_numbers<[1], [0], [0], [1], [0, 0, 1, 1], [], []>} : vector<32x128xf32>, vector<128x128xf32>, vector<32x128xf32> -> vector<32x128xf32>
    %113 = arith.addf %109, %112 : vector<32x128xf32>
    %c2_52 = arith.constant 2 : index
    %c0_53 = arith.constant 0 : index
    %c0_54 = arith.constant 0 : index
    %114 = vector.load %arg3[%c2_52, %c0_53, %c0_54] : memref<3x128x128xf32, #tpu.memory_space<vmem>>, vector<1x128x128xf32>
    %115 = vector.shape_cast %114 : vector<1x128x128xf32> to vector<128x128xf32>
    %cst_55 = arith.constant dense<0.000000e+00> : vector<32x128xf32>
    %116 = tpu.matmul %106, %115, %cst_55 {dimension_numbers = #tpu.dot_dimension_numbers<[1], [0], [0], [1], [0, 0, 1, 1], [], []>} : vector<32x128xf32>, vector<128x128xf32>, vector<32x128xf32> -> vector<32x128xf32>
    %117 = arith.addf %113, %116 : vector<32x128xf32>
    %c0_56 = arith.constant 0 : index
    %c0_57 = arith.constant 0 : index
    %118 = vector.load %arg6[%c0_56, %c0_57] : memref<1x128xf32, #tpu.memory_space<vmem>>, vector<1x128xf32>
    %c0_58 = arith.constant 0 : index
    %c0_59 = arith.constant 0 : index
    %119 = vector.load %arg7[%c0_58, %c0_59] : memref<1x128xf32, #tpu.memory_space<vmem>>, vector<1x128xf32>
    %cst_60 = arith.constant dense<0.000000e+00> : vector<128xf32>
    %120 = vector.multi_reduction <add>, %117, %cst_60 [0] : vector<32x128xf32> to vector<128xf32>
    %121 = vector.shape_cast %120 : vector<128xf32> to vector<1x128xf32>
    %c8_i32_61 = arith.constant 8 : i32
    %122 = tpu.dynamic_rotate %121 by %c8_i32_61 dim 1 : vector<1x128xf32>, i32 -> vector<1x128xf32>
    %123 = arith.addf %121, %122 : vector<1x128xf32>
    %c16_i32_62 = arith.constant 16 : i32
    %124 = tpu.dynamic_rotate %123 by %c16_i32_62 dim 1 : vector<1x128xf32>, i32 -> vector<1x128xf32>
    %125 = arith.addf %123, %124 : vector<1x128xf32>
    %c32_i32_63 = arith.constant 32 : i32
    %126 = tpu.dynamic_rotate %125 by %c32_i32_63 dim 1 : vector<1x128xf32>, i32 -> vector<1x128xf32>
    %127 = arith.addf %125, %126 : vector<1x128xf32>
    %c64_i32_64 = arith.constant 64 : i32
    %128 = tpu.dynamic_rotate %127 by %c64_i32_64 dim 1 : vector<1x128xf32>, i32 -> vector<1x128xf32>
    %129 = arith.addf %127, %128 : vector<1x128xf32>
    %130 = arith.mulf %117, %117 : vector<32x128xf32>
    %cst_65 = arith.constant dense<0.000000e+00> : vector<128xf32>
    %131 = vector.multi_reduction <add>, %130, %cst_65 [0] : vector<32x128xf32> to vector<128xf32>
    %132 = vector.shape_cast %131 : vector<128xf32> to vector<1x128xf32>
    %c8_i32_66 = arith.constant 8 : i32
    %133 = tpu.dynamic_rotate %132 by %c8_i32_66 dim 1 : vector<1x128xf32>, i32 -> vector<1x128xf32>
    %134 = arith.addf %132, %133 : vector<1x128xf32>
    %c16_i32_67 = arith.constant 16 : i32
    %135 = tpu.dynamic_rotate %134 by %c16_i32_67 dim 1 : vector<1x128xf32>, i32 -> vector<1x128xf32>
    %136 = arith.addf %134, %135 : vector<1x128xf32>
    %c32_i32_68 = arith.constant 32 : i32
    %137 = tpu.dynamic_rotate %136 by %c32_i32_68 dim 1 : vector<1x128xf32>, i32 -> vector<1x128xf32>
    %138 = arith.addf %136, %137 : vector<1x128xf32>
    %c64_i32_69 = arith.constant 64 : i32
    %139 = tpu.dynamic_rotate %138 by %c64_i32_69 dim 1 : vector<1x128xf32>, i32 -> vector<1x128xf32>
    %140 = arith.addf %138, %139 : vector<1x128xf32>
    %cst_70 = arith.constant 0.001953125 : f32
    %141 = vector.broadcast %cst_70 : f32 to vector<1x128xf32>
    %142 = arith.mulf %129, %141 : vector<1x128xf32>
    %cst_71 = arith.constant 0.001953125 : f32
    %143 = vector.broadcast %cst_71 : f32 to vector<1x128xf32>
    %144 = arith.mulf %140, %143 : vector<1x128xf32>
    %145 = arith.mulf %142, %142 : vector<1x128xf32>
    %146 = arith.subf %144, %145 : vector<1x128xf32>
    %cst_72 = arith.constant 9.99999974E-6 : f32
    %147 = vector.broadcast %cst_72 : f32 to vector<1x128xf32>
    %148 = arith.addf %146, %147 : vector<1x128xf32>
    %149 = math.rsqrt %148 : vector<1x128xf32>
    %150 = arith.mulf %118, %149 : vector<1x128xf32>
    %151 = arith.mulf %142, %150 : vector<1x128xf32>
    %152 = arith.subf %119, %151 : vector<1x128xf32>
    %153 = vector.broadcast %150 : vector<1x128xf32> to vector<32x128xf32>
    %154 = arith.mulf %117, %153 : vector<32x128xf32>
    %155 = vector.broadcast %152 : vector<1x128xf32> to vector<32x128xf32>
    %156 = arith.addf %154, %155 : vector<32x128xf32>
    %cst_73 = arith.constant 0.000000e+00 : f32
    %157 = vector.broadcast %cst_73 : f32 to vector<32x128xf32>
    %158 = arith.maximumf %156, %157 : vector<32x128xf32>
    %c0_74 = arith.constant 0 : index
    %c0_75 = arith.constant 0 : index
    %159 = vector.load %arg8[%c0_74, %c0_75] : memref<32x128xf32, #tpu.memory_space<vmem>>, vector<32x128xf32>
    tpu.vector_store %arg8[%c0_74, %c0_75], %158 {strides = array<i32>} : memref<32x128xf32, #tpu.memory_space<vmem>>, vector<32x128xf32>,
    return
  }
  func.func @transform_0(%arg0: i32) -> (i32, i32) {
    %c0_i32 = arith.constant 0 : i32
    %c0_i32_0 = arith.constant 0 : i32
    %c0_i32_1 = arith.constant 0 : i32
    return %c0_i32, %c0_i32_0 : i32, i32
  }
  func.func @transform_1(%arg0: i32) -> (i32, i32, i32) {
    %c0_i32 = arith.constant 0 : i32
    %c0_i32_0 = arith.constant 0 : i32
    %c0_i32_1 = arith.constant 0 : i32
    %c0_i32_2 = arith.constant 0 : i32
    return %c0_i32, %c0_i32_0, %c0_i32_1 : i32, i32, i32
  }
  func.func @transform_2(%arg0: i32) -> (i32, i32, i32) {
    %c0_i32 = arith.constant 0 : i32
    %c0_i32_0 = arith.constant 0 : i32
    %c0_i32_1 = arith.constant 0 : i32
    %c0_i32_2 = arith.constant 0 : i32
    return %c0_i32, %c0_i32_0, %c0_i32_1 : i32, i32, i32
  }
  func.func @transform_3(%arg0: i32) -> (i32, i32) {
    %c0_i32 = arith.constant 0 : i32
    %c0_i32_0 = arith.constant 0 : i32
    %c0_i32_1 = arith.constant 0 : i32
    return %c0_i32, %c0_i32_0 : i32, i32
  }
  func.func @transform_4(%arg0: i32) -> (i32, i32) {
    %c0_i32 = arith.constant 0 : i32
    %c0_i32_0 = arith.constant 0 : i32
    %c0_i32_1 = arith.constant 0 : i32
    return %c0_i32, %c0_i32_0 : i32, i32
  }
  func.func @transform_5(%arg0: i32) -> (i32, i32) {
    %c0_i32 = arith.constant 0 : i32
    %c0_i32_0 = arith.constant 0 : i32
    %c0_i32_1 = arith.constant 0 : i32
    return %c0_i32, %c0_i32_0 : i32, i32
  }
  func.func @transform_6(%arg0: i32) -> (i32, i32) {
    %c0_i32 = arith.constant 0 : i32
    %c0_i32_0 = arith.constant 0 : i32
    %c0_i32_1 = arith.constant 0 : i32
    return %c0_i32, %c0_i32_0 : i32, i32
  }
  func.func @transform_7(%arg0: i32) -> (i32, i32) {
    %c0_i32 = arith.constant 0 : i32
    %c0_i32_0 = arith.constant 0 : i32
    %c0_i32_1 = arith.constant 0 : i32
    return %c0_i32, %c0_i32_0 : i32, i32
  }
}

</mosaic_0001>

<bundles_post_ra>
// kernel: tpu_custom_call.1
= control target key start
LH: loop header
LB: loop body
LE: loop exit
PB: predicated region body
PF: predicated region fallthrough
CT: control target
= control target key end

     0   :  { %12 = vsyncpa [#allocation3], 0  ;;  %s1078_s0 = inlined_call_operand.hbm [shape: f32[32,64], index: 0, kind: input, shape index: {}]   ;;  %s1079_s1 = inlined_call_operand.hbm [shape: f32[3,64,128], index: 1, kind: input, shape index: {}]   ;;  %s1080_s2 = inlined_call_operand.hbm [shape: f32[3,128,128], index: 2, kind: input, shape index: {}]   ;;  %s1081_s3 = inlined_call_operand.vmem [shape: f32[1,128], index: 3, kind: input, shape index: {}]   ;;  %s1082_s4 = inlined_call_operand.vmem [shape: f32[1,128], index: 4, kind: input, shape index: {}]   ;;  %s1083_s5 = inlined_call_operand.vmem [shape: f32[1,128], index: 5, kind: input, shape index: {}]   ;;  %s1084_s6 = inlined_call_operand.vmem [shape: f32[1,128], index: 6, kind: input, shape index: {}]   ;;  %s1085_s7 = inlined_call_operand.hbm [shape: f32[32,128], index: 7, kind: output, shape index: {}]  }
   0x1   :  { %13 = vsyncpa [#allocation6], 0 }
   0x2   :  { %14 = vsyncpa [#allocation4], 0  ;;  %s32_s26 = sshll.u32 %s1079_s1, 4  ;;  %s827_s27 = smov [#allocation5]   ;;  %s33_s26 = int_to_ptr.hbm [resolvable:$true] %s32_s26 }
   0x3   :  { %s34_s28 = sshll.u32 %s827_s27, 4  ;;  %s19_s8 = sshll.u32 %s1078_s0, 4  ;;  %s35_s28 = int_to_ptr.vmem [resolvable:$true] %s34_s28  ;;  %s20_s8 = int_to_ptr.hbm [resolvable:$true] %s19_s8 }
   0x4   :  { %s828_s9 = smov 128   ;;  %s829_s10 = smov 8  }
   0x5   :  { %40 = dma.hbm_to_vmem [thread:$0]  %s33_s26, 3072, %s35_s28, [#allocation6], %s828_s9, %s828_s9, %s829_s10  }
   0x6   :  { %s830_s11 = smov [#allocation2]   ;;  %s45_s1 = sshll.u32 %s1080_s2, 4  ;;  %s46_s1 = int_to_ptr.hbm [resolvable:$true] %s45_s1 }
   0x7   :  { %s21_s12 = sshll.u32 %s830_s11, 4  ;;  %s831_s0 = smov [#allocation7]   ;;  %s22_s12 = int_to_ptr.vmem [resolvable:$true] %s21_s12 }
   0x8   :  { %27 = dma.hbm_to_vmem [thread:$0]  %s20_s8, 512, %s22_s12, [#allocation3], %s828_s9, %s828_s9, %s829_s10  }
   0x9   :  { %s47_s15 = sshll.u32 %s831_s0, 4  ;;  %s48_s15 = int_to_ptr.vmem [resolvable:$true] %s47_s15 }
   0xa   :  { %53 = dma.hbm_to_vmem [thread:$0]  %s46_s1, 6144, %s48_s15, [#allocation6], %s828_s9, %s828_s9, %s829_s10  }
   0xb   :  { %821 = dma.done.wait [#allocation3], 512  }
   0xc   :  { %822 = vsyncadd [#allocation3], 4294966784 }
   0xd   :  { %823 = dma.done.wait [#allocation6], 9216  }
   0xe   :  { %824 = vsyncadd [#allocation6], 4294958080  ;;  %v273_v0 = vld [vmem:[#allocation5 + $0xb8] sm:$0xff]  ;;  %v272_v1 = vld [vmem:[#allocation5 + $0xb0] sm:$0xff]  ;;  %v78_v5 = vlaneseq  ;;  %vm182_vm3 = vcmask 523264   ;;  %s832_s2 = smov 16  }
   0xf   :  { %v181_v2 = vld [vmem:[#allocation5 + $0x78] sm:$0xff]  ;;  %294 = vmatpush.msra.mxu2 %v273_v0  ;;  %v180_v4 = vld [vmem:[#allocation5 + $0x70] sm:$0xff]  ;;  %v271_v6 = vld [vmem:[#allocation5 + $0xa8] sm:$0xff]  ;;  %s833_s16 = smov 32   ;;  %s834_s17 = smov 64  }
  0x10   :  { %203 = vmatpush.msra.mxu0 %v181_v2  ;;  %v172_v3 = vld [vmem:[#allocation5 + $0x38] sm:$0xff]  ;;  %v171_v7 = vld [vmem:[#allocation5 + $0x30] sm:$0xff]  ;;  %v179_v8 = vld [vmem:[#allocation5 + $0x68] sm:$0xff]  ;;  %v894_v13 = vshrl.u32 %v78_v5, 7  ;;  %s662_s26 = sshll.u32 %s1085_s7, 4  ;;  %s663_s26 = int_to_ptr.hbm [resolvable:$true] %s662_s26 }
  0x11   :  { %244 = vmatpush.msra.mxu1 %v172_v3  ;;  %295 = vmatpush.msra.mxu2 %v272_v1  ;;  %v170_v9 = vld [vmem:[#allocation5 + $0x28] sm:$0xff]  ;;  %v270_v10 = vld [vmem:[#allocation5 + $0xa0] sm:$0xff]  ;;  %v269_v14 = vld [vmem:[#allocation5 + $0x98] sm:$0xff] }
  0x12   :  { %204 = vmatpush.msra.mxu0 %v180_v4  ;;  %v178_v11 = vld [vmem:[#allocation5 + $0x60] sm:$0xff]  ;;  %v177_v15 = vld [vmem:[#allocation5 + $0x58] sm:$0xff]  ;;  %v75_v18 = vld [vmem:[#allocation2 + $0x8] sm:$0xff]  ;;  %v87_v19 = vand.u32 15, %v894_v13  ;;  %vm139_vm0 = vcmp.lt.s32.totalorder %v894_v13, 1  ;;  %vm156_vm1 = vcmp.lt.s32.totalorder %v894_v13, 7 }
  0x13   :  { %245 = vmatpush.msra.mxu1 %v171_v7  ;;  %296 = vmatpush.msra.mxu2 %v271_v6  ;;  %v169_v12 = vld [vmem:[#allocation5 + $0x20] sm:$0xff]  ;;  %v168_v17 = vld [vmem:[#allocation5 + $0x18] sm:$0xff]  ;;  %v268_v21 = vld [vmem:[#allocation5 + $0x90] sm:$0xff]  ;;  %v153_v26 = vrot.slane %v75_v18, 1  ;;  %v80_v30 = vadd.s32 8, %v894_v13  ;;  %v136_v44 = vrot.slane %v75_v18, 7 }
  0x14   :  { %205 = vmatpush.msra.mxu0 %v179_v8  ;;  %v896_v16 = vld [vmem:[#allocation2] sm:$0xff]  ;;  %v176_v22 = vld [vmem:[#allocation5 + $0x50] sm:$0xff]  ;;  %v900_v23 = vld [vmem:[#allocation2 + $0x18] sm:$0xff]  ;;  %vm907_vm2 = vcmp.eq.s32.totalorder %v87_v19, 0  ;;  %v81_v45 = vadd.s32 16, %v894_v13  ;;  %v82_v51 = vadd.s32 24, %v894_v13 }
  0x15   :  { %246 = vmatpush.msra.mxu1 %v170_v9  ;;  %297 = vmatpush.msra.mxu2 %v270_v10  ;;  %v135_v20 = vrot.slane %v896_v16, 7  ;;  %v167_v24 = vld [vmem:[#allocation5 + $0x10] sm:$0xff]  ;;  %v152_v25 = vrot.slane %v896_v16, 1  ;;  %v138_v27 = vrot.slane %v900_v23, 7  ;;  %v267_v28 = vld [vmem:[#allocation5 + $0x88] sm:$0xff]  ;;  %v266_v35 = vld [vmem:[#allocation5 + $0x80] sm:$0xff] }
  0x16   :  { %206 = vmatpush.msra.mxu0 %v178_v11  ;;  %v175_v29 = vld [vmem:[#allocation5 + $0x48] sm:$0xff]  ;;  %v76_v34 = vld [vmem:[#allocation2 + $0x10] sm:$0xff]  ;;  %v174_v36 = vld [vmem:[#allocation5 + $0x40] sm:$0xff]  ;;  %v94_v40 = vand.u32 15, %v80_v30  ;;  %v101_v48 = vand.u32 15, %v81_v45  ;;  %v155_v50 = vrot.slane %v900_v23, 1 }
  0x17   :  { %247 = vmatpush.msra.mxu1 %v169_v12  ;;  %298 = vmatpush.msra.mxu2 %v269_v14  ;;  %v166_v31 = vld [vmem:[#allocation5 + $0x8] sm:$0xff]  ;;  %v143_v33 = vsel %vm139_vm0, %v138_v27, %v135_v20  ;;  %v159_v37 = vsel %vm156_vm1, %v152_v25, %v153_v26  ;;  %v165_v38 = vld [vmem:[#allocation5] sm:$0xff]  ;;  %v154_v41 = vrot.slane %v76_v34, 1  ;;  %v142_v47 = vsel %vm139_vm0, %v135_v20, %v136_v44  ;;  %vm688_vm10 = vmneg %vm907_vm2 }
  0x18   :  { %207 = vmatpush.msra.mxu0 %v177_v15  ;;  %v144_v39 = vsel %vm907_vm2, 0.0, %v143_v33  ;;  %vm921_vm4 = vcmp.eq.s32.totalorder %v94_v40, 15  ;;  %v137_v49 = vrot.slane %v76_v34, 7  ;;  %vm937_vm5 = vcmp.eq.s32.totalorder %v101_v48, 0 }
  0x19   :  { %248 = vmatpush.msra.mxu1 %v168_v17  ;;  %299 = vmatpush.msra.mxu2 %v268_v21  ;;  %v158_v43 = vsel %vm156_vm1, %v153_v26, %v154_v41  ;;  %v157_v54 = vsel %vm156_vm1, %v154_v41, %v155_v50  ;;  %v108_v56 = vand.u32 15, %v82_v51  ;;  %v160_v58 = vsel %vm156_vm1, %v155_v50, %v152_v25  ;;  %vm690_vm11 = vmneg %vm937_vm5 }
  0x1a   :  { %208 = vmatpush.msra.mxu0 %v176_v22  ;;  %v162_v46 = vsel %vm921_vm4, 0.0, %v158_v43  ;;  %v141_v53 = vsel %vm139_vm0, %v136_v44, %v137_v49  ;;  %v140_v60 = vsel %vm139_vm0, %v137_v49, %v138_v27  ;;  %vm692_vm12 = vmneg %vm921_vm4 }
  0x1b   :  { %249 = vmatpush.msra.mxu1 %v167_v24  ;;  %300 = vmatpush.msra.mxu2 %v267_v28  ;;  %v146_v55 = vsel %vm937_vm5, 0.0, %v141_v53  ;;  %vm950_vm6 = vcmp.eq.s32.totalorder %v108_v56, 15  ;;  %v458_v56 = vld [vmem:[#allocation7 + $0xf0] sm:$0xff] }
  0x1c   :  { %209 = vmatpush.msra.mxu0 %v175_v29  ;;  %v164_v59 = vsel %vm950_vm6, 0.0, %v160_v58  ;;  %v442_v58 = vld [vmem:[#allocation7 + $0x78] sm:$0xff]  ;;  %vm694_vm13 = vmneg %vm950_vm6 }
  0x1d   :  { %250 = vmatpush.msra.mxu1 %v166_v31  ;;  %301 = vmatpush.msra.mxu2 %v266_v35 }
  0x1e   :  { %210 = vmatpush.msra.mxu0 %v174_v36  ;;  %684 = vmatmul.msk.f32.vlgmr.msra.gmra.mxu2 %vm182_vm3, %v159_v37 }
  0x1f   :  { %251 = vmatpush.msra.mxu1 %v165_v38  ;;  %676 = vmatmul.msk.f32.vlgmr.msra.gmra.mxu0 %vm182_vm3, %v896_v16 }
  0x20   :  { %680 = vmatmul.msk.f32.vlgmr.msra.gmra.mxu1 %vm182_vm3, %v144_v39  ;;  %489 = vmatpush.msrb.mxu0 %v442_v58 }
  0x21   :  { %696 = vmatpush.msrb.mxu2 %v442_v58 }
  0x26   :  { %685 = vmatmul.msk.f32.gmra.mxu2 %vm182_vm3, %v162_v46 }
  0x27   :  { %677 = vmatmul.msk.f32.gmra.mxu0 %vm182_vm3, %v75_v18 }
  0x28   :  { %681 = vmatmul.msk.f32.gmra.mxu1 %vm182_vm3, %v142_v47 }
  0x2e   :  { %686 = vmatmul.msk.f32.gmra.mxu2 %vm182_vm3, %v157_v54 }
  0x2f   :  { %678 = vmatmul.msk.f32.gmra.mxu0 %vm182_vm3, %v76_v34 }
  0x30   :  { %682 = vmatmul.msk.f32.gmra.mxu1 %vm182_vm3, %v146_v55  ;;  %v459_v55 = vld [vmem:[#allocation7 + $0xf8] sm:$0xff] }
  0x31   :  { %460 = vmatpush.msra.mxu3 %v459_v55  ;;  %v427_v55 = vld [vmem:[#allocation7] sm:$0xff] }
  0x33   :  { %461 = vmatpush.msra.mxu3 %v458_v56  ;;  %v519_v56 = vld [vmem:[#allocation7 + $0x100] sm:$0xff] }
  0x36   :  { %687 = vmatmul.msk.f32.gmra.mxu2 %vm182_vm3, %v164_v59  ;;  %v534_v59 = vld [vmem:[#allocation7 + $0x178] sm:$0xff] }
  0x37   :  { %679 = vmatmul.msk.f32.gmra.mxu0 %vm182_vm3, %v900_v23  ;;  %535 = vmatpush.msrb.mxu1 %v534_v59 }
  0x38   :  { %683 = vmatmul.msk.f32.gmra.mxu1 %vm182_vm3, %v140_v60  ;;  %v457_v60 = vld [vmem:[#allocation7 + $0xe8] sm:$0xff] }
  0x39   :  { %462 = vmatpush.msra.mxu3 %v457_v60 }
  0x9c   :  { %v212_v61 = vpop.f32.mrf.mxu0 }
  0x9d   :  { %v253_v62 = vpop.f32.mrf.mxu1 }
  0x9e   :  { %v254_v6 = vadd.f32 %v253_v62, %v212_v61  ;;  %v441_v61 = vld [vmem:[#allocation7 + $0x70] sm:$0xff] }
  0x9f   :  { %v533_v62 = vld [vmem:[#allocation7 + $0x170] sm:$0xff]  ;;  %490 = vmatpush.msrb.mxu0 %v441_v61  ;;  %697 = vmatpush.msrb.mxu2 %v441_v61 }
  0xa0   :  { %536 = vmatpush.msrb.mxu1 %v533_v62 }
  0xa1   :  { %v303_v63 = vpop.f32.mrf.mxu2 }
  0xa2   :  { %v966_v10 = vadd.f32 %v303_v63, %v254_v6  ;;  %v456_v63 = vld [vmem:[#allocation7 + $0xe0] sm:$0xff]  ;;  %v438_v6 = vld [vmem:[#allocation7 + $0x58] sm:$0xff] }
  0xa3   :  { %463 = vmatpush.msra.mxu3 %v456_v63  ;;  %v319_v63 = vld [vmem:[%s1081_s3] sm:$0x1] }
  0xa4   :  { %v215_v0 = vpop.f32.mrf.mxu0  ;;  %v342_v17 = vmul.f32 %v966_v10, %v966_v10 }
  0xa5   :  { %v256_v1 = vpop.f32.mrf.mxu1 }
  0xa6   :  { %v257_v5 = vadd.f32 %v256_v1, %v215_v0  ;;  %v440_v0 = vld [vmem:[#allocation7 + $0x68] sm:$0xff] }
  0xa7   :  { %v532_v1 = vld [vmem:[#allocation7 + $0x168] sm:$0xff]  ;;  %491 = vmatpush.msrb.mxu0 %v440_v0  ;;  %698 = vmatpush.msrb.mxu2 %v440_v0 }
  0xa8   :  { %537 = vmatpush.msrb.mxu1 %v532_v1 }
  0xa9   :  { %v306_v2 = vpop.f32.mrf.mxu2 }
  0xaa   :  { %v964_v9 = vadd.f32 %v306_v2, %v257_v5  ;;  %v455_v2 = vld [vmem:[#allocation7 + $0xd8] sm:$0xff]  ;;  %v454_v5 = vld [vmem:[#allocation7 + $0xd0] sm:$0xff] }
  0xab   :  { %464 = vmatpush.msra.mxu3 %v455_v2 }
  0xac   :  { %v218_v3 = vpop.f32.mrf.mxu0  ;;  %v343_v15 = vmul.f32 %v964_v9, %v964_v9  ;;  %v321_v18 = vadd.f32 %v964_v9, %v966_v10 }
  0xad   :  { %v259_v4 = vpop.f32.mrf.mxu1  ;;  %465 = vmatpush.msra.mxu3 %v454_v5 }
  0xae   :  { %v260_v7 = vadd.f32 %v259_v4, %v218_v3  ;;  %v346_v21 = vadd.f32 %v343_v15, %v342_v17  ;;  %v439_v3 = vld [vmem:[#allocation7 + $0x60] sm:$0xff]  ;;  %v528_v17 = vld [vmem:[#allocation7 + $0x148] sm:$0xff] }
  0xaf   :  { %v531_v4 = vld [vmem:[#allocation7 + $0x160] sm:$0xff]  ;;  %492 = vmatpush.msrb.mxu0 %v439_v3  ;;  %699 = vmatpush.msrb.mxu2 %v439_v3 }
  0xb0   :  { %538 = vmatpush.msrb.mxu1 %v531_v4  ;;  %v452_v15 = vld [vmem:[#allocation7 + $0xc0] sm:$0xff] }
  0xb1   :  { %v309_v8 = vpop.f32.mrf.mxu2  ;;  %493 = vmatpush.msrb.mxu0 %v438_v6  ;;  %700 = vmatpush.msrb.mxu2 %v438_v6  ;;  %v320_v3 = vld [vmem:[%s1082_s4] sm:$0x1] }
  0xb2   :  { %v968_v11 = vadd.f32 %v309_v8, %v260_v7  ;;  %v530_v7 = vld [vmem:[#allocation7 + $0x158] sm:$0xff]  ;;  %v453_v8 = vld [vmem:[#allocation7 + $0xc8] sm:$0xff] }
  0xb3   :  { %539 = vmatpush.msrb.mxu1 %v530_v7  ;;  %466 = vmatpush.msra.mxu3 %v453_v8 }
  0xb4   :  { %v221_v12 = vpop.f32.mrf.mxu0  ;;  %v344_v19 = vmul.f32 %v968_v11, %v968_v11  ;;  %v322_v22 = vadd.f32 %v321_v18, %v968_v11  ;;  %v451_v18 = vld [vmem:[#allocation7 + $0xb8] sm:$0xff] }
  0xb5   :  { %v262_v14 = vpop.f32.mrf.mxu1  ;;  %467 = vmatpush.msra.mxu3 %v452_v15 }
  0xb6   :  { %v263_v16 = vadd.f32 %v262_v14, %v221_v12  ;;  %v347_v24 = vadd.f32 %v346_v21, %v344_v19  ;;  %v437_v12 = vld [vmem:[#allocation7 + $0x50] sm:$0xff]  ;;  %v527_v21 = vld [vmem:[#allocation7 + $0x140] sm:$0xff] }
  0xb7   :  { %v529_v14 = vld [vmem:[#allocation7 + $0x150] sm:$0xff]  ;;  %494 = vmatpush.msrb.mxu0 %v437_v12  ;;  %701 = vmatpush.msrb.mxu2 %v437_v12 }
  0xb8   :  { %540 = vmatpush.msrb.mxu1 %v529_v14  ;;  %468 = vmatpush.msra.mxu3 %v451_v18 }
  0xb9   :  { %v312_v20 = vpop.f32.mrf.mxu2 }
  0xba   :  { %v979_v23 = vadd.f32 %v312_v20, %v263_v16  ;;  %v436_v16 = vld [vmem:[#allocation7 + $0x48] sm:$0xff]  ;;  %541 = vmatpush.msrb.mxu1 %v528_v17  ;;  %v435_v20 = vld [vmem:[#allocation7 + $0x40] sm:$0xff] }
  0xbb   :  { %495 = vmatpush.msrb.mxu0 %v436_v16  ;;  %702 = vmatpush.msrb.mxu2 %v436_v16 }
  0xbc   :  { %v323_v25 = vadd.f32 %v322_v22, %v979_v23  ;;  %v345_v26 = vmul.f32 %v979_v23, %v979_v23  ;;  %v450_v22 = vld [vmem:[#allocation7 + $0xb0] sm:$0xff]  ;;  %542 = vmatpush.msrb.mxu1 %v527_v21 }
  0xbd   :  { %496 = vmatpush.msrb.mxu0 %v435_v20  ;;  %703 = vmatpush.msrb.mxu2 %v435_v20 }
  0xbe   :  { %v324_v27 = vrot.slane %v323_v25, 4  ;;  %v348_v28 = vadd.f32 %v347_v24, %v345_v26  ;;  %469 = vmatpush.msra.mxu3 %v450_v22  ;;  %v434_v24 = vld [vmem:[#allocation7 + $0x38] sm:$0xff] }
  0xbf   :  { %497 = vmatpush.msrb.mxu0 %v434_v24  ;;  %704 = vmatpush.msrb.mxu2 %v434_v24 }
  0xc0   :  { %v325_v29 = vadd.f32 %v324_v27, %v323_v25  ;;  %v349_v30 = vrot.slane %v348_v28, 4  ;;  %v526_v25 = vld [vmem:[#allocation7 + $0x138] sm:$0xff]  ;;  %v449_v27 = vld [vmem:[#allocation7 + $0xa8] sm:$0xff] }
  0xc1   :  { %543 = vmatpush.msrb.mxu1 %v526_v25  ;;  %470 = vmatpush.msra.mxu3 %v449_v27 }
  0xc2   :  { %v326_v31 = vrot.slane %v325_v29, 2  ;;  %v350_v33 = vadd.f32 %v349_v30, %v348_v28  ;;  %v433_v28 = vld [vmem:[#allocation7 + $0x30] sm:$0xff]  ;;  %v448_v30 = vld [vmem:[#allocation7 + $0xa0] sm:$0xff] }
  0xc3   :  { %498 = vmatpush.msrb.mxu0 %v433_v28  ;;  %705 = vmatpush.msrb.mxu2 %v433_v28 }
  0xc4   :  { %v327_v34 = vadd.f32 %v326_v31, %v325_v29  ;;  %v351_v35 = vrot.slane %v350_v33, 2  ;;  %v525_v29 = vld [vmem:[#allocation7 + $0x130] sm:$0xff]  ;;  %v432_v31 = vld [vmem:[#allocation7 + $0x28] sm:$0xff]  ;;  %471 = vmatpush.msra.mxu3 %v448_v30 }
  0xc5   :  { %544 = vmatpush.msrb.mxu1 %v525_v29  ;;  %499 = vmatpush.msrb.mxu0 %v432_v31 }
  0xc6   :  { %v328_v36 = vrot.slane %v327_v34, 1  ;;  %v352_v38 = vadd.f32 %v351_v35, %v350_v33  ;;  %v524_v33 = vld [vmem:[#allocation7 + $0x128] sm:$0xff]  ;;  %v431_v35 = vld [vmem:[#allocation7 + $0x20] sm:$0xff]  ;;  %706 = vmatpush.msrb.mxu2 %v432_v31 }
  0xc7   :  { %545 = vmatpush.msrb.mxu1 %v524_v33  ;;  %500 = vmatpush.msrb.mxu0 %v431_v35 }
  0xc8   :  { %v329_v37 = vadd.f32 %v328_v36, %v327_v34  ;;  %v353_v39 = vrot.slane %v352_v38, 1  ;;  %v447_v34 = vld [vmem:[#allocation7 + $0x98] sm:$0xff]  ;;  %707 = vmatpush.msrb.mxu2 %v431_v35 }
  0xc9   :  { %472 = vmatpush.msra.mxu3 %v447_v34 }
  0xca   :  { %330 = vrot.lane.b32.xlu0 %v329_v37, %s829_s10  ;;  %v354_v40 = vadd.f32 %v353_v39, %v352_v38  ;;  %v446_v38 = vld [vmem:[#allocation7 + $0x90] sm:$0xff] }
  0xcb   :  { %473 = vmatpush.msra.mxu3 %v446_v38 }
  0xd2   :  { %355 = vrot.lane.b32.xlu0 %v354_v40, %s829_s10 }
 0x13c   :  { %v331_v41 = vpop.permute.xlu0 %330 }
 0x13d   :  { %v332_v43 = vadd.f32 %v331_v41, %v329_v37  ;;  %v523_v37 = vld [vmem:[#allocation7 + $0x120] sm:$0xff] }
 0x13e   :  { %546 = vmatpush.msrb.mxu1 %v523_v37 }
 0x13f   :  { %333 = vrot.lane.b32.xlu1 %v332_v43, %s832_s2 }
 0x144   :  { %v356_v44 = vpop.permute.xlu0 %355 }
 0x145   :  { %v357_v45 = vadd.f32 %v356_v44, %v354_v40  ;;  %v430_v40 = vld [vmem:[#allocation7 + $0x18] sm:$0xff]  ;;  %v445_v44 = vld [vmem:[#allocation7 + $0x88] sm:$0xff] }
 0x146   :  { %501 = vmatpush.msrb.mxu0 %v430_v40  ;;  %708 = vmatpush.msrb.mxu2 %v430_v40 }
 0x147   :  { %358 = vrot.lane.b32.xlu1 %v357_v45, %s832_s2  ;;  %474 = vmatpush.msra.mxu3 %v445_v44 }
 0x1b1   :  { %v334_v46 = vpop.permute.xlu1 %333 }
 0x1b2   :  { %v335_v47 = vadd.f32 %v334_v46, %v332_v43  ;;  %v522_v43 = vld [vmem:[#allocation7 + $0x118] sm:$0xff] }
 0x1b3   :  { %547 = vmatpush.msrb.mxu1 %v522_v43 }
 0x1b4   :  { %336 = vrot.lane.b32.xlu2 %v335_v47, %s833_s16 }
 0x1b9   :  { %v359_v48 = vpop.permute.xlu1 %358 }
 0x1ba   :  { %v360_v49 = vadd.f32 %v359_v48, %v357_v45  ;;  %v429_v45 = vld [vmem:[#allocation7 + $0x10] sm:$0xff] }
 0x1bb   :  { %v521_v48 = vld [vmem:[#allocation7 + $0x110] sm:$0xff]  ;;  %502 = vmatpush.msrb.mxu0 %v429_v45  ;;  %709 = vmatpush.msrb.mxu2 %v429_v45 }
 0x1bc   :  { %361 = vrot.lane.b32.xlu2 %v360_v49, %s833_s16  ;;  %548 = vmatpush.msrb.mxu1 %v521_v48 }
 0x20e   :  { %v337_v50 = vpop.permute.xlu2 %336 }
 0x20f   :  { %v990_v51 = vadd.f32 %v337_v50, %v335_v47 }
 0x211   :  { %339 = vrot.lane.b32.xlu0 %v990_v51, %s834_s17 }
 0x216   :  { %v362_v53 = vpop.permute.xlu2 %361 }
 0x217   :  { %v994_v54 = vadd.f32 %v362_v53, %v360_v49  ;;  %v444_v49 = vld [vmem:[#allocation7 + $0x80] sm:$0xff]  ;;  %v520_v53 = vld [vmem:[#allocation7 + $0x108] sm:$0xff] }
 0x218   :  { %475 = vmatpush.msra.mxu3 %v444_v49  ;;  %549 = vmatpush.msrb.mxu1 %v520_v53 }
 0x219   :  { %364 = vrot.lane.b32.xlu1 %v994_v54, %s834_s17 }
 0x21a   :  { %550 = vmatpush.msrb.mxu1 %v519_v56 }
 0x283   :  { %v340_v19 = vpop.permute.xlu0 %339 }
 0x284   :  { %v341_v26 = vadd.f32 %v340_v19, %v990_v51  ;;  %v428_v51 = vld [vmem:[#allocation7 + $0x8] sm:$0xff] }
 0x285   :  { %503 = vmatpush.msrb.mxu0 %v428_v51  ;;  %710 = vmatpush.msrb.mxu2 %v428_v51 }
 0x286   :  { %v367_v36 = vmul.f32 0.001953125, %v341_v26 }
 0x287   :  { %504 = vmatpush.msrb.mxu0 %v427_v55  ;;  %711 = vmatpush.msrb.mxu2 %v427_v55 }
 0x288   :  { %v369_v46 = vmul.f32 %v367_v36, %v367_v36 }
 0x28b   :  { %v365_v39 = vpop.permute.xlu1 %364 }
 0x28c   :  { %v366_v41 = vadd.f32 %v365_v39, %v994_v54 }
 0x28e   :  { %v368_v47 = vmul.f32 0.001953125, %v366_v41 }
 0x290   :  { %v370_v50 = vsub.f32 %v368_v47, %v369_v46 }
 0x292   :  { %v371_v54 = vadd.f32 1e-05, %v370_v50 }
 0x294   :  { %721 = vrsqrt.f32 %v371_v54  ;;  %vm378_vm8 = vweird.f32 %v371_v54 }
 0x29a   :  { %v722_v58 = vpop.eup %721 }
 0x29b   :  { %v373_v59 = vmul.f32 %v722_v58, %v371_v54  ;;  %vm379_vm7 = vweird.f32 %v722_v58 }
 0x29c   :  { %vm380_vm9 = vmor %vm378_vm8, %vm379_vm7 }
 0x29d   :  { %v374_v60 = vmul.f32 %v722_v58, %v373_v59 }
 0x29f   :  { %v375_v61 = vmul.f32 0.5, %v374_v60 }
 0x2a1   :  { %v376_v62 = vsub.f32 1.5, %v375_v61 }
 0x2a3   :  { %v377_v0 = vmul.f32 %v722_v58, %v376_v62 }
 0x2a5   :  { %v381_v1 = vsel %vm380_vm9, %v722_v58, %v377_v0 }
 0x2a6   :  { %v382_v2 = vmul.f32 %v381_v1, %v319_v63 }
 0x2a8   :  { %v383_v4 = vmul.f32 %v382_v2, %v367_v36  ;;  %v386_v5 = vperm.slane %v382_v2, 0 }
 0x2aa   :  { %v384_v6 = vsub.f32 %v320_v3, %v383_v4  ;;  %v388_v7 = vmul.f32 %v386_v5, %v966_v10  ;;  %v391_v12 = vmul.f32 %v386_v5, %v979_v23  ;;  %v389_v14 = vmul.f32 %v386_v5, %v964_v9 }
 0x2ab   :  { %v390_v18 = vmul.f32 %v386_v5, %v968_v11 }
 0x2ac   :  { %v393_v8 = vperm.slane %v384_v6, 0 }
 0x2ae   :  { %v395_v15 = vadd.f32 %v393_v8, %v388_v7  ;;  %v398_v16 = vadd.f32 %v393_v8, %v391_v12  ;;  %v396_v17 = vadd.f32 %v393_v8, %v389_v14  ;;  %v397_v22 = vadd.f32 %v393_v8, %v390_v18 }
 0x2b0   :  { %v399_v19 = vmax.f32 %v395_v15, 0.0  ;;  %v402_v20 = vmax.f32 %v398_v16, 0.0  ;;  %v400_v21 = vmax.f32 %v396_v17, 0.0  ;;  %v401_v11 = vmax.f32 %v397_v22, 0.0 }
 0x2b2   :  { %476 = vmatmul.f32.vlgmr.msra.gmra.mxu3 %v399_v19  ;;  %v403_v24 = vrot.slane %v399_v19, 7  ;;  %v406_v25 = vrot.slane %v402_v20, 7  ;;  %v404_v10 = vrot.slane %v400_v21, 7  ;;  %v415_v26 = vrot.slane %v399_v19, 1 }
 0x2b3   :  { %v416_v23 = vrot.slane %v400_v21, 1  ;;  %v405_v29 = vrot.slane %v401_v11, 7  ;;  %v417_v30 = vrot.slane %v401_v11, 1  ;;  %v418_v33 = vrot.slane %v402_v20, 1 }
 0x2b4   :  { %v410_v9 = vsel %vm139_vm0, %v406_v25, %v403_v24  ;;  %v409_v27 = vsel %vm139_vm0, %v403_v24, %v404_v10 }
 0x2b5   :  { %689 = vmatmul.msk.f32.vlgmr.msrb.gmra.mxu0 %vm688_vm10, %v410_v9  ;;  %508 = vmatmul.f32.vlgmr.msrb.gmra.mxu2 %v409_v27  ;;  %v421_v28 = vsel %vm156_vm1, %v415_v26, %v416_v23  ;;  %v408_v32 = vsel %vm139_vm0, %v404_v10, %v405_v29  ;;  %v420_v31 = vsel %vm156_vm1, %v416_v23, %v417_v30 }
 0x2b6   :  { %551 = vmatmul.f32.vlgmr.msrb.gmra.mxu1 %v421_v28  ;;  %v407_v34 = vsel %vm139_vm0, %v405_v29, %v406_v25  ;;  %v419_v52 = vsel %vm156_vm1, %v417_v30, %v418_v33  ;;  %v422_v42 = vsel %vm156_vm1, %v418_v33, %v415_v26 }
 0x2ba   :  { %479 = vmatmul.f32.gmra.mxu3 %v400_v21 }
 0x2bd   :  { %691 = vmatmul.msk.f32.gmra.mxu2 %vm690_vm11, %v408_v32 }
 0x2be   :  { %693 = vmatmul.msk.f32.gmra.mxu1 %vm692_vm12, %v420_v31 }
 0x2c2   :  { %482 = vmatmul.f32.gmra.mxu3 %v401_v11 }
 0x2c5   :  { %514 = vmatmul.f32.gmra.mxu2 %v407_v34 }
 0x2c6   :  { %557 = vmatmul.f32.gmra.mxu1 %v419_v52 }
 0x2ca   :  { %485 = vmatmul.f32.gmra.mxu3 %v402_v20 }
 0x2ce   :  { %695 = vmatmul.msk.f32.gmra.mxu1 %vm694_vm13, %v422_v42 }
 0x332   :  { %v506_v41 = vpop.f32.mrf.mxu0 }
 0x333   :  { %v552_v35 = vpop.f32.mrf.mxu1 }
 0x335   :  { %v477_v36 = vpop.f32.mrf.mxu3 }
 0x336   :  { %v507_v46 = vadd.f32 %v506_v41, %v477_v36 }
 0x338   :  { %v509_v37 = vpop.f32.mrf.mxu2  ;;  %v1036_v57 = vadd.f32 %v552_v35, %v507_v46 }
 0x33a   :  { %v591_v53 = vmul.f32 %v1036_v57, %v1036_v57 }
 0x33b   :  { %v555_v38 = vpop.f32.mrf.mxu1 }
 0x33d   :  { %v480_v39 = vpop.f32.mrf.mxu3 }
 0x33e   :  { %v510_v43 = vadd.f32 %v509_v37, %v480_v39  ;;  %v568_v39 = vld [vmem:[%s1083_s5] sm:$0x1]  ;;  %s835_s5 = smov [#allocation8]  }
 0x340   :  { %v512_v40 = vpop.f32.mrf.mxu2  ;;  %v1034_v48 = vadd.f32 %v555_v38, %v510_v43 }
 0x342   :  { %v592_v13 = vmul.f32 %v1034_v48, %v1034_v48  ;;  %v570_v54 = vadd.f32 %v1034_v48, %v1036_v57 }
 0x343   :  { %v558_v44 = vpop.f32.mrf.mxu1 }
 0x344   :  { %v595_v59 = vadd.f32 %v592_v13, %v591_v53 }
 0x345   :  { %v483_v45 = vpop.f32.mrf.mxu3 }
 0x346   :  { %v513_v47 = vadd.f32 %v512_v40, %v483_v45 }
 0x348   :  { %v1038_v49 = vadd.f32 %v558_v44, %v513_v47  ;;  %v515_v50 = vpop.f32.mrf.mxu2  ;;  %v569_v44 = vld [vmem:[%s1084_s6] sm:$0x1]  ;;  %s660_s6 = sshll.u32 %s835_s5, 4  ;;  %s661_s6 = int_to_ptr.vmem [resolvable:$true] %s660_s6 }
 0x34a   :  { %v593_v55 = vmul.f32 %v1038_v49, %v1038_v49  ;;  %v571_v60 = vadd.f32 %v570_v54, %v1038_v49 }
 0x34b   :  { %v561_v58 = vpop.f32.mrf.mxu1 }
 0x34c   :  { %v596_v62 = vadd.f32 %v595_v59, %v593_v55 }
 0x34d   :  { %v486_v51 = vpop.f32.mrf.mxu3 }
 0x34e   :  { %v516_v56 = vadd.f32 %v515_v50, %v486_v51 }
 0x350   :  { %v1049_v61 = vadd.f32 %v561_v58, %v516_v56 }
 0x352   :  { %v572_v63 = vadd.f32 %v571_v60, %v1049_v61  ;;  %v594_v0 = vmul.f32 %v1049_v61, %v1049_v61 }
 0x354   :  { %v573_v1 = vrot.slane %v572_v63, 4  ;;  %v597_v2 = vadd.f32 %v596_v62, %v594_v0 }
 0x356   :  { %v574_v3 = vadd.f32 %v573_v1, %v572_v63  ;;  %v598_v4 = vrot.slane %v597_v2, 4 }
 0x358   :  { %v575_v5 = vrot.slane %v574_v3, 2  ;;  %v599_v6 = vadd.f32 %v598_v4, %v597_v2 }
 0x35a   :  { %v576_v7 = vadd.f32 %v575_v5, %v574_v3  ;;  %v600_v8 = vrot.slane %v599_v6, 2 }
 0x35c   :  { %v577_v12 = vrot.slane %v576_v7, 1  ;;  %v601_v14 = vadd.f32 %v600_v8, %v599_v6 }
 0x35e   :  { %v578_v15 = vadd.f32 %v577_v12, %v576_v7  ;;  %v602_v16 = vrot.slane %v601_v14, 1 }
 0x360   :  { %579 = vrot.lane.b32.xlu2 %v578_v15, %s829_s10  ;;  %v603_v17 = vadd.f32 %v602_v16, %v601_v14 }
 0x362   :  { %604 = vrot.lane.b32.xlu0 %v603_v17, %s829_s10 }
 0x3ba   :  { %v580_v18 = vpop.permute.xlu2 %579 }
 0x3bb   :  { %v581_v19 = vadd.f32 %v580_v18, %v578_v15 }
 0x3bd   :  { %582 = vrot.lane.b32.xlu1 %v581_v19, %s832_s2 }
 0x3d4   :  { %v605_v20 = vpop.permute.xlu0 %604 }
 0x3d5   :  { %v606_v21 = vadd.f32 %v605_v20, %v603_v17 }
 0x3d7   :  { %607 = vrot.lane.b32.xlu2 %v606_v21, %s832_s2 }
 0x42f   :  { %v583_v22 = vpop.permute.xlu1 %582 }
 0x430   :  { %v584_v24 = vadd.f32 %v583_v22, %v581_v19 }
 0x431   :  { %v608_v25 = vpop.permute.xlu2 %607 }
 0x432   :  { %v609_v10 = vadd.f32 %v608_v25, %v606_v21  ;;  %585 = vrot.lane.b32.xlu0 %v584_v24, %s833_s16 }
 0x434   :  { %610 = vrot.lane.b32.xlu1 %v609_v10, %s833_s16 }
 0x4a4   :  { %v586_v26 = vpop.permute.xlu0 %585 }
 0x4a5   :  { %v587_v23 = vadd.f32 %v586_v26, %v584_v24 }
 0x4a6   :  { %v611_v9 = vpop.permute.xlu1 %610 }
 0x4a7   :  { %v612_v27 = vadd.f32 %v611_v9, %v609_v10  ;;  %588 = vrot.lane.b32.xlu2 %v587_v23, %s834_s17 }
 0x4a9   :  { %613 = vrot.lane.b32.xlu0 %v612_v27, %s834_s17 }
 0x501   :  { %v589_v11 = vpop.permute.xlu2 %588 }
 0x502   :  { %v590_v28 = vadd.f32 %v589_v11, %v587_v23 }
 0x504   :  { %v616_v29 = vmul.f32 0.001953125, %v590_v28 }
 0x506   :  { %v618_v31 = vmul.f32 %v616_v29, %v616_v29 }
 0x51b   :  { %v614_v30 = vpop.permute.xlu0 %613 }
 0x51c   :  { %v615_v32 = vadd.f32 %v614_v30, %v612_v27 }
 0x51e   :  { %v617_v33 = vmul.f32 0.001953125, %v615_v32 }
 0x520   :  { %v619_v34 = vsub.f32 %v617_v33, %v618_v31 }
 0x522   :  { %v620_v52 = vadd.f32 1e-05, %v619_v34 }
 0x524   :  { %723 = vrsqrt.f32 %v620_v52  ;;  %vm627_vm15 = vweird.f32 %v620_v52 }
 0x52a   :  { %v724_v42 = vpop.eup %723 }
 0x52b   :  { %v622_v35 = vmul.f32 %v724_v42, %v620_v52  ;;  %vm628_vm14 = vweird.f32 %v724_v42 }
 0x52c   :  { %vm629_vm0 = vmor %vm627_vm15, %vm628_vm14 }
 0x52d   :  { %v623_v36 = vmul.f32 %v724_v42, %v622_v35 }
 0x52f   :  { %v624_v37 = vmul.f32 0.5, %v623_v36 }
 0x531   :  { %v625_v38 = vsub.f32 1.5, %v624_v37 }
 0x533   :  { %v626_v40 = vmul.f32 %v724_v42, %v625_v38 }
 0x535   :  { %v630_v41 = vsel %vm629_vm0, %v724_v42, %v626_v40 }
 0x536   :  { %v631_v43 = vmul.f32 %v630_v41, %v568_v39 }
 0x538   :  { %v632_v45 = vmul.f32 %v631_v43, %v616_v29  ;;  %v635_v46 = vperm.slane %v631_v43, 0 }
 0x53a   :  { %v633_v47 = vsub.f32 %v569_v44, %v632_v45  ;;  %v637_v13 = vmul.f32 %v635_v46, %v1036_v57  ;;  %v638_v51 = vmul.f32 %v635_v46, %v1034_v48  ;;  %v639_v53 = vmul.f32 %v635_v46, %v1038_v49 }
 0x53b   :  { %v640_v54 = vmul.f32 %v635_v46, %v1049_v61 }
 0x53c   :  { %v642_v50 = vperm.slane %v633_v47, 0 }
 0x53e   :  { %v644_v55 = vadd.f32 %v642_v50, %v637_v13  ;;  %v645_v56 = vadd.f32 %v642_v50, %v638_v51  ;;  %v646_v58 = vadd.f32 %v642_v50, %v639_v53  ;;  %v647_v59 = vadd.f32 %v642_v50, %v640_v54 }
 0x540   :  { %v648_v60 = vmax.f32 %v644_v55, 0.0  ;;  %v649_v62 = vmax.f32 %v645_v56, 0.0  ;;  %v650_v63 = vmax.f32 %v646_v58, 0.0  ;;  %v651_v57 = vmax.f32 %v647_v59, 0.0 }
 0x542   :  { %652 = vst [vmem:[#allocation8] sm:$0xff] %v648_v60 }
 0x543   :  { %653 = vst [vmem:[#allocation8 + $0x8] sm:$0xff] %v649_v62 }
 0x544   :  { %654 = vst [vmem:[#allocation8 + $0x10] sm:$0xff] %v650_v63 }
 0x545   :  { %655 = vst [vmem:[#allocation8 + $0x18] sm:$0xff] %v651_v57 }
 0x546   :  { %668 = dma.vmem_to_hbm [thread:$0]  %s661_s6, 512, %s663_s26, [#allocation4], %s828_s9, %s828_s9, %s829_s10  }
 0x547   :  { %825 = dma.done.wait [#allocation4], 512  }
 0x548   :  { %826 = vsyncadd [#allocation4], 4294966784 }
 0x549   :  { %673 = vsyncpa [#allocation3], 1 }
 0x54a   :  { %674 = vsyncpa [#allocation6], 1 }
 0x54b   :  { %675 = vsyncpa [#allocation4], 1 }

</bundles_post_ra>
